<compile_context>
chip_gen: v7x
topology: tpu7x:2x2x1
jax: 0.10.0
libtpu: 0.0.40
codegen_flags: <defaults>
</compile_context>

<pallas_src>
import functools

import jax
import jax.numpy as jnp
from jax.experimental import pallas as pl
from jax.experimental.pallas import tpu as pltpu


def _resident_gather_kernel(ids_ref, table_ref, out_ref, *, scale, tokens_per_block):
    """Gather rows from a VMEM-resident table and scale by sqrt(D).

    ids_ref:   SMEM (N_pad,) int32  -- scalar-prefetched token ids (whole array)
    table_ref: VMEM (V, D)          -- whole table, single copy (not pipelined)
    out_ref:   VMEM (T, D)          -- output tile for this grid step
    """
    vocab = table_ref.shape[0]
    base = pl.program_id(0) * tokens_per_block

    def body(t, carry):
        # Clamp defensively: out-of-range ids would read unchecked VMEM.
        idx = jnp.clip(ids_ref[base + t], 0, vocab - 1)
        row = table_ref[pl.ds(idx, 1), :]                       # (1, D)
        out_ref[pl.ds(t, 1), :] = (row * scale).astype(out_ref.dtype)
        return carry

    jax.lax.fori_loop(0, tokens_per_block, body, 0)


def _dma_gather_kernel(ids_ref, table_hbm, out_ref, row_buf, copy_sems, *,
                       scale, tokens_per_block):
    """Large-vocab path: per-row DMA gather with double buffering (table in HBM).

    ids_ref:   SMEM (N_pad,) int32
    table_hbm: HBM (V, D)   (memory_space=pl.ANY)
    out_ref:   VMEM (T, D)
    row_buf:   VMEM (2, 1, D) scratch
    copy_sems: DMA semaphores (2,)
    """
    vocab = table_hbm.shape[0]
    base = pl.program_id(0) * tokens_per_block

    def start_row(t, slot):
        idx = jnp.clip(ids_ref[base + t], 0, vocab - 1)
        pltpu.make_async_copy(
            table_hbm.at[pl.ds(idx, 1), :], row_buf.at[slot], copy_sems.at[slot]
        ).start()

    start_row(0, 0)

    def body(t, carry):
        slot = jax.lax.rem(t, 2)

        @pl.when(t + 1 < tokens_per_block)
        def _():
            start_row(t + 1, 1 - slot)

        # Wait for the current row (descriptor rebuilt with matching dst/sem).
        pltpu.make_async_copy(
            table_hbm.at[pl.ds(0, 1), :], row_buf.at[slot], copy_sems.at[slot]
        ).wait()
        out_ref[pl.ds(t, 1), :] = (row_buf[slot] * scale).astype(out_ref.dtype)
        return carry

    jax.lax.fori_loop(0, tokens_per_block, body, 0)


def _pick_token_block(n, max_tokens):
    """Largest tile <= max_tokens that divides n (multiple of 8), so no padding
    and no output slice copy; fall back to max_tokens (padded) otherwise."""
    if n <= max_tokens:
        return n
    start = (max_tokens // 8) * 8
    for t in range(start, 7, -8):
        if n % t == 0:
            return t
    return max_tokens


def embedding_forward(ids, table, *, tokens_per_block=1024):
    """ids: (B, S) int -> (B, S, D) with out = table[ids] * sqrt(D)."""
    B, S = ids.shape
    V, D = table.shape
    N = B * S
    scale = float(D) ** 0.5
    itemsize = jnp.dtype(table.dtype).itemsize

    # --- per-generation VMEM capacity & residency strategy -------------------
    try:
        info = pltpu.get_tpu_info()
        vmem_cap = int(getattr(info, "vmem_capacity_bytes", 64 << 20))
    except Exception:  # pragma: no cover - conservative fallback (v7x per-TC)
        vmem_cap = 64 << 20
    table_bytes = V * D * itemsize
    resident = table_bytes <= vmem_cap // 2  # leave room for output tiles etc.

    # --- token tile size ------------------------------------------------------
    # Budget ~1/4 of VMEM for the double-buffered output tile.
    max_t_vmem = max(8, (vmem_cap // 4) // (2 * D * itemsize))
    max_t = max(8, (min(tokens_per_block, max_t_vmem) // 8) * 8)
    T = _pick_token_block(N, max_t)
    n_blocks = pl.cdiv(N, T)
    N_pad = n_blocks * T

    flat_ids = ids.reshape(N).astype(jnp.int32)
    if N_pad != N:
        flat_ids = jnp.pad(flat_ids, (0, N_pad - N))  # pad id 0 is in-bounds

    out_tile_bytes = 2 * T * D * itemsize  # double-buffered output tile
    if resident:
        kernel = functools.partial(
            _resident_gather_kernel, scale=scale, tokens_per_block=T)
        # Untiled VMEM spec: the table is copied into VMEM once (no per-step
        # double-buffering of a grid-invariant operand).
        table_spec = pl.BlockSpec(memory_space=pltpu.MemorySpace.VMEM)
        scratch_shapes = []
        needed = table_bytes + out_tile_bytes + (2 << 20)
    else:
        kernel = functools.partial(
            _dma_gather_kernel, scale=scale, tokens_per_block=T)
        table_spec = pl.BlockSpec(memory_space=pl.ANY)  # stays in HBM
        scratch_shapes = [
            pltpu.VMEM((2, 1, D), table.dtype),
            pltpu.SemaphoreType.DMA((2,)),
        ]
        needed = out_tile_bytes + 4 * D * itemsize + (2 << 20)

    vmem_limit = int(min(max(needed, 32 << 20), vmem_cap))

    grid_spec = pltpu.PrefetchScalarGridSpec(
        num_scalar_prefetch=1,                     # ids -> SMEM
        grid=(n_blocks,),
        in_specs=[table_spec],
        out_specs=pl.BlockSpec((T, D), lambda i, ids: (i, 0)),
        scratch_shapes=scratch_shapes,
    )

    out_flat = pl.pallas_call(
        kernel,
        out_shape=jax.ShapeDtypeStruct((N_pad, D), table.dtype),
        grid_spec=grid_spec,
        compiler_params=pltpu.CompilerParams(
            dimension_semantics=("parallel",),     # independent tiles: 2 TCs on v7x
            vmem_limit_bytes=vmem_limit,
        ),
    )(flat_ids, table)

    if N_pad != N:
        # TODO(synk): handle the ragged last block in-kernel to avoid this copy;
        # _pick_token_block avoids it whenever a divisor tile exists.
        out_flat = out_flat[:N]
    return out_flat.reshape(B, S, D)


if __name__ == "__main__":
    vocab_size = 64
    embed_dim = 128
    batch, seq = 2, 8

    key = jax.random.PRNGKey(0)
    k_table, k_ids = jax.random.split(key)

    # Deterministic synthetic parameters (nn.Embedding weight: (vocab, D)).
    table = jax.random.normal(k_table, (vocab_size, embed_dim), dtype=jnp.float32)
    ids = jax.random.randint(k_ids, (batch, seq), 0, vocab_size, dtype=jnp.int32)

    out = embedding_forward(ids, table)
    out = jax.block_until_ready(out)

    # Reference check (pure JAX) — gather path is bit-exact.
    ref = table[ids] * (embed_dim ** 0.5)
    assert out.shape == (batch, seq, embed_dim)
    assert out.dtype == jnp.float32
    assert jnp.allclose(out, ref, atol=1e-6, rtol=1e-6), float(
        jnp.max(jnp.abs(out - ref))
    )

    print("KERNEL_OK")
</pallas_src>

<mosaic_0001>
module attributes {stable_mosaic.version = 11 : i64} {
  func.func @_resident_gather_kernel(%arg0: i32, %arg1: memref<16xi32, #tpu.memory_space<smem>>, %arg2: memref<64x128xf32, #tpu.memory_space<vmem>>, %arg3: memref<16x128xf32, #tpu.memory_space<vmem>>) attributes {dimension_semantics = [#tpu.dimension_semantics<parallel>], iteration_bounds = array<i64: 1>, scalar_prefetch = 1 : i64, scratch_operands = 0 : i64, tpu.core_type = #tpu.core_type<tc>, window_params = [{pipeline_mode = #tpu.pipeline_mode<synchronous>, transform_indices = @transform_0, window_bounds = array<i64: 64, 128>}, {transform_indices = @transform_1, window_bounds = array<i64: 16, 128>}]} {
    %c16_i32 = arith.constant 16 : i32
    %0 = arith.muli %arg0, %c16_i32 : i32
    %c0_i32 = arith.constant 0 : i32
    %c16_i32_0 = arith.constant 16 : i32
    %1 = arith.addi %c0_i32, %c16_i32_0 : i32
    %c1_i32 = arith.constant 1 : i32
    scf.for %arg4 = %c0_i32 to %1 step %c1_i32  : i32 {
      %2 = arith.addi %0, %arg4 : i32
      %3 = arith.index_cast %2 : i32 to index
      %4 = memref.load %arg1[%3] : memref<16xi32, #tpu.memory_space<smem>>
      %c0_i32_2 = arith.constant 0 : i32
      %c63_i32 = arith.constant 63 : i32
      %5 = arith.maxsi %c0_i32_2, %4 : i32
      %6 = arith.minsi %c63_i32, %5 : i32
      %7 = arith.index_cast %6 : i32 to index
      %c0 = arith.constant 0 : index
      %8 = vector.load %arg2[%7, %c0] : memref<64x128xf32, #tpu.memory_space<vmem>>, vector<1x128xf32>
      %cst = arith.constant 11.3137083 : f32
      %9 = vector.broadcast %cst : f32 to vector<1x128xf32>
      %10 = arith.mulf %8, %9 : vector<1x128xf32>
      %11 = arith.index_cast %arg4 : i32 to index
      %c0_3 = arith.constant 0 : index
      %12 = vector.load %arg3[%11, %c0_3] : memref<16x128xf32, #tpu.memory_space<vmem>>, vector<1x128xf32>
      tpu.vector_store %arg3[%11, %c0_3], %10 {strides = array<i32>} : memref<16x128xf32, #tpu.memory_space<vmem>>, vector<1x128xf32>,
    }
    %c16_i32_1 = arith.constant 16 : i32
    return
  }
  func.func @transform_0(%arg0: i32, %arg1: memref<16xi32, #tpu.memory_space<smem>>) -> (i32, i32) {
    %c0_i32 = arith.constant 0 : i32
    %c0_i32_0 = arith.constant 0 : i32
    %c0_i32_1 = arith.constant 0 : i32
    return %c0_i32, %c0_i32_0 : i32, i32
  }
  func.func @transform_1(%arg0: i32, %arg1: memref<16xi32, #tpu.memory_space<smem>>) -> (i32, i32) {
    %c0_i32 = arith.constant 0 : i32
    %c0_i32_0 = arith.constant 0 : i32
    return %arg0, %c0_i32 : i32, i32
  }
}

</mosaic_0001>

<bundles_post_ra>
// kernel: tpu_custom_call.1
= control target key start
LH: loop header
LB: loop body
LE: loop exit
PB: predicated region body
PF: predicated region fallthrough
CT: control target
= control target key end

     0   :  { %s220_s0 = inlined_call_operand.hbm [shape: s32[16], index: 0, kind: input, shape index: {}]   ;;  %s221_s1 = inlined_call_operand.hbm [shape: f32[64,128], index: 1, kind: input, shape index: {}]   ;;  %s222_s2 = inlined_call_operand.hbm [shape: f32[16,128], index: 2, kind: output, shape index: {}]  }
   0x1   :  { %s90_s11 = scalar_lea.hbm %s220_s0, 16 }
   0x2   :  { %p91_p0 = scmp.ne.s32.totalorder %s220_s0, %s90_s11  ;;  %p94_p1 = scmp.lt.u32.totalorder %s90_s11, %s220_s0 }
   0x4   :  { %p96_p2 = pnand %p94_p1, %p91_p0 }
   0x6   :  { %99 = shalt.err (!%p96_p2)  }
   0x7   :  { %s158_s16 = smov [#allocation3]  }
   0x8   :  { %8 = dma.hbm_to_smem %s220_s0, 16, %s158_s16, [#allocation2] }
   0x9   :  { %148 = dma.done.wait [#allocation2], 16 }
   0xa   :  { %149 = vsyncadd [#allocation2], 4294967280 }
   0xb   :  { %10 = sfence }
   0xc   :  { %11 = vsyncpa [#allocation5], 0 }
   0xd   :  { %12 = vsyncpa [#allocation6], 0  ;;  %s159_s19 = smov [#allocation4]   ;;  %s100_s23 = scalar_lea.hbm %s221_s1, 1024 }
   0xe   :  { %s18_s20 = sshll.u32 %s159_s19, 4  ;;  %p101_p3 = scmp.ne.s32.totalorder %s221_s1, %s100_s23  ;;  %s19_s20 = int_to_ptr.vmem [resolvable:$true] %s18_s20 }
   0xf   :  { %p104_p4 = scmp.lt.u32.totalorder %s100_s23, %s221_s1 }
  0x11   :  { %p106_p5 = pnand %p104_p4, %p101_p3 }
  0x13   :  { %109 = shalt.err (!%p106_p5)
}
  0x14   :  { %s110_s0 = scalar_lea.vmem %s19_s20, 1024  ;;  %p115_p7 = scmp.lt.s32.totalorder %s19_s20, %s19_s20 }
  0x15   :  { %p111_p6 = scmp.ne.s32.totalorder %s19_s20, %s110_s0  ;;  %p116_p8 = scmp.lt.s32.totalorder %s110_s0, %s110_s0 }
  0x17   :  { %p117_p9 = por %p116_p8, %p115_p7 }
  0x19   :  { %p118_p10 = pnand %p117_p9, %p111_p6 }
  0x1b   :  { %121 = shalt.err (!%p118_p10)
}
  0x1c   :  { %s160_s28 = smov 128   ;;  %s161_s29 = smov 8  }
  0x1d   :  { %24 = dma.hbm_to_vmem [thread:$0]  %s221_s1, 1024, %s19_s20, [#allocation5], %s160_s28, %s160_s28, %s161_s29  }
  0x1e   :  { %150 = dma.done.wait [#allocation5], 1024  }
  0x1f   :  { %151 = vsyncadd [#allocation5], 4294966272  ;;  %s154_s4 = smov 0  }
  0x20 LB: > { %s36_s5 = sld [smem:[#allocation3 + %s156_s4]]  ;;  %s44_s7 = scalar_lea.vmem [#allocation7], %s156_s4  ;;  %s156_s4 = sphi %s154_s4, %s34_s4  }
  0x21   : > { %s34_s4 = sadd.s32 1, %s156_s4  }
  0x22   : > { %p31_p13 = scmp.ge.s32.totalorder %s34_s4, 16  }
  0x23   :  { %s162_s1 = smov (%p31_p13), [#allocation7]  }
  0x24   :  { %s51_s8 = sshll.u32 (%p31_p13), %s162_s1, 4  ;;  %s52_s8 = int_to_ptr.vmem [resolvable:$true] %s51_s8 }
  0x25   :  { %s122_s9 = scalar_lea.vmem (%p31_p13), %s52_s8, 256  ;;  %p127_p1 = scmp.lt.s32.totalorder (%p31_p13), %s52_s8, %s52_s8 }
  0x26   : > { %p37_p11 = scmp.gt.s32.totalorder %s36_s5, 0  ;;  %p70_p12 = scmp.lt.s32.totalorder %s36_s5, 63 }
  0x27   :  { %p123_p0 = scmp.ne.s32.totalorder (%p31_p13), %s52_s8, %s122_s9  ;;  %p128_p2 = scmp.lt.s32.totalorder (%p31_p13), %s122_s9, %s122_s9 }
  0x28   : > { %s224_s5 = smov (!%p37_p11, %s36_s5), 0  ;;  %33 = sbr.rel (!%p31_p13) target bundleno = 32 (0x20), region = 37 }
  0x29   : > { %s226_s5 = smov (!%p70_p12, %s224_s5), 63  ;;  %p129_p3 = por (%p31_p13), %p128_p2, %p127_p1 }
  0x2a   : > { %s41_s6 = scalar_lea.vmem [#allocation4], %s226_s5 }
  0x2b   : > { %v42_v0 = vld [vmem:[%s41_s6] sm:$0x1]  ;;  %p130_p4 = pnand (%p31_p13), %p129_p3, %p123_p0 }
  0x2c   : > { %v43_v1 = vmul.f32 11.313708, %v42_v0 }
  0x2e   : > { %45 = vst [vmem:[%s44_s7] sm:$0x1] %v43_v1 }
  0x2f   :  { %133 = shalt.err (!%p130_p4)
}
  0x30   :  { %s134_s12 = scalar_lea.hbm %s222_s2, 256 }
  0x31   :  { %p135_p5 = scmp.ne.s32.totalorder %s222_s2, %s134_s12  ;;  %p138_p6 = scmp.lt.u32.totalorder %s134_s12, %s222_s2 }
  0x33   :  { %p140_p7 = pnand %p138_p6, %p135_p5 }
  0x35   :  { %143 = shalt.err (!%p140_p7)
}
  0x36   :  { %57 = dma.vmem_to_hbm [thread:$0]  %s52_s8, 256, %s222_s2, [#allocation6], %s160_s28, %s160_s28, %s161_s29  }
  0x37   :  { %152 = dma.done.wait [#allocation6], 256  }
  0x38   :  { %153 = vsyncadd [#allocation6], 4294967040 }
  0x39   :  { %61 = vsyncpa [#allocation5], 1 }
  0x3a   :  { %62 = vsyncpa [#allocation6], 1 }

</bundles_post_ra>
